<compile_context>
chip_gen: v7x
topology: tpu7x:2x2x1
jax: 0.10.0
libtpu: 0.0.40
codegen_flags: <defaults>
</compile_context>

<pallas_src>
import functools

import jax
import jax.numpy as jnp
import numpy as np
from jax import lax
from jax.experimental import pallas as pl
from jax.experimental.pallas import tpu as pltpu

_BLK = 8      # row block for the greedy sweep (one f32 sublane tile)
_LANE = 128   # lane width; the box count is padded to a multiple of this


def _roi_nms_kernel(boxes_nc_ref, boxes_cn_ref, scores_ref, keep_ref, *,
                    nms_thr, score_thr, n, blk):
    """One image: score filter + greedy NMS on score-sorted, class-offset boxes."""
    # Column-side ("j") coordinate rows, loaded once, lane-dense [1, n].
    bcn = boxes_cn_ref[...]                                    # [4, n]
    x1r, y1r, x2r, y2r = bcn[0:1, :], bcn[1:2, :], bcn[2:3, :], bcn[3:4, :]
    area_r = (x2r - x1r) * (y2r - y1r)                         # [1, n]

    # filter_by_lambda(scores > score_threshold) feeds the NMS candidate set.
    alive0 = (scores_ref[...] > score_thr).astype(jnp.float32)  # [1, n]

    col_ids = lax.broadcasted_iota(jnp.int32, (blk, n), 1)     # [blk, n]
    row_ids = lax.broadcasted_iota(jnp.int32, (blk, n), 0)     # [blk, n]

    def block_body(b, alive):
        r0 = pl.multiple_of(b * blk, blk)

        # Row-side ("i") coordinates for this block, [blk, 1] each.
        bblk = boxes_nc_ref[pl.ds(r0, blk), :]                 # [blk, 4]
        x1c, y1c = bblk[:, 0:1], bblk[:, 1:2]
        x2c, y2c = bblk[:, 2:3], bblk[:, 3:4]
        area_c = (x2c - x1c) * (y2c - y1c)                     # [blk, 1]

        w = jnp.maximum(jnp.minimum(x2c, x2r) - jnp.maximum(x1c, x1r), 0.0)
        h = jnp.maximum(jnp.minimum(y2c, y2r) - jnp.maximum(y1c, y1r), 0.0)
        inter = w * h                                          # [blk, n]
        union = area_c + area_r - inter
        rid = row_ids + r0
        # iou > thr  <=>  inter > thr * union (no EUP divide, no epsilon bias);
        # triangular mask (only later, lower-score boxes get suppressed) folded in.
        sup = (inter > nms_thr * union) & (col_ids > rid)      # [blk, n] bool
        sup_f = sup.astype(jnp.float32)

        # Gather this block's alive bits ([blk,1]) and its blk x blk internal
        # suppression matrix without any dynamic lane slicing:
        sel = col_ids == rid                                   # one-hot per row
        ablk = jnp.sum(jnp.where(sel, alive, 0.0), axis=1, keepdims=True)
        # subT[j, k] = sup_f[k, r0 + j]   ("block row k suppresses block row j")
        subT = lax.dot_general(sel.astype(jnp.float32), sup_f,
                               (((1,), (1,)), ((), ())),
                               preferred_element_type=jnp.float32)  # [blk, blk]

        # Serial greedy sweep over the block's rows: the dependency chain only
        # touches tiny static-sliced values; the full-width kills are dense,
        # independent vector ops (a suppressed/filtered box never suppresses).
        for k in range(blk):
            ak = ablk[k:k + 1, :] > 0.5                        # [1, 1]
            ablk = jnp.where((subT[:, k:k + 1] > 0.5) & ak, 0.0, ablk)
            alive = jnp.where(sup[k:k + 1, :] & ak, 0.0, alive)
        return alive

    alive = lax.fori_loop(0, n // blk, block_body, alive0)
    keep_ref[...] = alive


def roi_decode(boxes, scores, cls_idxs, *, nms_threshold, score_threshold,
               input_padding):
    """JAX wrapper reproducing RoIDecoder.forward numeric semantics.

    boxes:    [B, N, 4] float32 (x1, y1, x2, y2)
    scores:   [B, N]    float32
    cls_idxs: [B, N]    class ids
    Returns (keep_mask [B, N] bool, decoded_boxes [B, N, 4]) in descending
    score order (the ordering batched_nms keep indices impose).
    """
    B, N, _ = boxes.shape
    pad_left, _pad_right, pad_top, _pad_bottom = input_padding

    # Glue (plain XLA): sort each image's boxes by descending score.
    order = jnp.argsort(-scores, axis=1)
    boxes_s = jnp.take_along_axis(boxes, order[..., None], axis=1)
    scores_s = jnp.take_along_axis(scores, order, axis=1)
    cls_s = jnp.take_along_axis(cls_idxs.astype(jnp.float32), order, axis=1)

    if nms_threshold is None:
        # Module skips filtering / NMS / inv_pad entirely in this case.
        return jnp.ones((B, N), jnp.bool_), boxes_s

    # inv_pad(left, right, top, bottom): hoisted out of the kernel (independent
    # of NMS; keeps the kernel output lane-dense instead of a [., N, 4] store).
    pad_vec = jnp.array([pad_left, pad_top, pad_left, pad_top], jnp.float32)
    dec_boxes = boxes_s - pad_vec[None, None, :]

    score_thr = float("-inf") if score_threshold is None else float(score_threshold)

    # Pad the box count to a lane multiple; padded slots get -inf scores and
    # degenerate boxes, so they are never kept and never suppress anything.
    n_pad_to = max(_LANE, ((N + _LANE - 1) // _LANE) * _LANE)
    pn = n_pad_to - N
    boxes_p = jnp.pad(boxes_s, ((0, 0), (0, pn), (0, 0)))
    scores_p = jnp.pad(scores_s, ((0, 0), (0, pn)), constant_values=-jnp.inf)
    cls_p = jnp.pad(cls_s, ((0, 0), (0, pn)))

    # torchvision batched_nms trick: offset each class into a disjoint
    # coordinate range so cross-class IoU is exactly zero.
    max_coord = jnp.max(boxes_p)
    boxes_off = boxes_p + (cls_p * (max_coord + 1.0))[..., None]

    boxes_nc = boxes_off                               # [B, Npad, 4]
    boxes_cn = jnp.swapaxes(boxes_off, 1, 2)           # [B, 4, Npad] (lane-dense)
    scores_in = scores_p[:, None, :]                   # [B, 1, Npad]

    kernel = functools.partial(
        _roi_nms_kernel,
        nms_thr=float(nms_threshold),
        score_thr=score_thr,
        n=n_pad_to,
        blk=_BLK)

    grid_spec = pltpu.PrefetchScalarGridSpec(
        num_scalar_prefetch=0,
        grid=(B,),
        in_specs=[
            pl.BlockSpec((None, n_pad_to, 4), lambda b: (b, 0, 0)),
            pl.BlockSpec((None, 4, n_pad_to), lambda b: (b, 0, 0)),
            pl.BlockSpec((None, 1, n_pad_to), lambda b: (b, 0, 0)),
        ],
        out_specs=pl.BlockSpec((None, 1, n_pad_to), lambda b: (b, 0, 0)),
    )

    keep_pad = pl.pallas_call(
        kernel,
        grid_spec=grid_spec,
        out_shape=jax.ShapeDtypeStruct((B, 1, n_pad_to), jnp.float32),
        compiler_params=pltpu.CompilerParams(
            dimension_semantics=("parallel",)),   # independent images; 2 TCs on v7x
    )(boxes_nc, boxes_cn, scores_in)

    keep = keep_pad[:, 0, :N] > 0.5

    # TODO(synk): TASK_STRUCT construction, variable-length keep-index lists and
    # transform.inverse_transform hooks are python-object plumbing with no
    # tensor equivalent; a fixed-shape keep mask + decoded boxes are returned.
    return keep, dec_boxes


def _reference_decode(boxes, scores, cls_idxs, nms_thr, score_thr, input_padding):
    """Plain numpy reference: score filter + class-aware greedy NMS + inv_pad."""
    boxes = np.asarray(boxes, np.float64)
    scores = np.asarray(scores, np.float64)
    cls_idxs = np.asarray(cls_idxs)
    B, N, _ = boxes.shape
    p_left, _pr, p_top, _pb = input_padding
    keep = np.zeros((B, N), bool)
    dec = np.zeros((B, N, 4), np.float64)
    for b in range(B):
        o = np.argsort(-scores[b], kind="stable")
        bs, ss, cs = boxes[b, o], scores[b, o], cls_idxs[b, o]
        alive = ss > score_thr
        for i in range(N):
            if not alive[i]:
                continue
            for j in range(i + 1, N):
                if cs[j] != cs[i]:
                    continue
                xx1 = max(bs[i, 0], bs[j, 0])
                yy1 = max(bs[i, 1], bs[j, 1])
                xx2 = min(bs[i, 2], bs[j, 2])
                yy2 = min(bs[i, 3], bs[j, 3])
                inter = max(xx2 - xx1, 0.0) * max(yy2 - yy1, 0.0)
                union = ((bs[i, 2] - bs[i, 0]) * (bs[i, 3] - bs[i, 1])
                         + (bs[j, 2] - bs[j, 0]) * (bs[j, 3] - bs[j, 1]) - inter)
                if inter > nms_thr * union:
                    alive[j] = False
        keep[b] = alive
        dec[b] = bs - np.array([p_left, p_top, p_left, p_top])
    return keep, dec


if __name__ == "__main__":
    key = jax.random.PRNGKey(0)
    B, N = 2, 16
    k1, k2, k3, k4 = jax.random.split(key, 4)

    xy = jax.random.uniform(k1, (B, N, 2), minval=0.0, maxval=64.0)
    wh = jax.random.uniform(k2, (B, N, 2), minval=4.0, maxval=32.0)
    boxes = jnp.concatenate([xy, xy + wh], axis=-1).astype(jnp.float32)
    scores = jax.random.uniform(k3, (B, N), dtype=jnp.float32)
    cls_idxs = jax.random.randint(k4, (B, N), 0, 3).astype(jnp.float32)

    nms_thr, score_thr = 0.5, 0.05
    input_padding = (2.0, 2.0, 4.0, 4.0)

    keep, dec_boxes = roi_decode(
        boxes, scores, cls_idxs,
        nms_threshold=nms_thr,
        score_threshold=score_thr,
        input_padding=input_padding)
    keep = jax.block_until_ready(keep)
    dec_boxes = jax.block_until_ready(dec_boxes)

    assert keep.shape == (B, N) and dec_boxes.shape == (B, N, 4)

    ref_keep, ref_dec = _reference_decode(
        boxes, scores, cls_idxs, nms_thr, score_thr, input_padding)
    assert np.array_equal(np.asarray(keep), ref_keep)
    assert np.allclose(np.asarray(dec_boxes), ref_dec, atol=1e-5)

    print("KERNEL_OK")
</pallas_src>

<mosaic_0001>
module attributes {stable_mosaic.version = 11 : i64} {
  func.func @_roi_nms_kernel(%arg0: i32, %arg1: memref<1x128x4xf32, #tpu.memory_space<vmem>>, %arg2: memref<1x4x128xf32, #tpu.memory_space<vmem>>, %arg3: memref<1x1x128xf32, #tpu.memory_space<vmem>>, %arg4: memref<1x1x128xf32, #tpu.memory_space<vmem>>) attributes {dimension_semantics = [#tpu.dimension_semantics<parallel>], iteration_bounds = array<i64: 2>, scalar_prefetch = 0 : i64, scratch_operands = 0 : i64, tpu.core_type = #tpu.core_type<tc>, window_params = [{transform_indices = @transform_0, window_bounds = array<i64: 1, 128, 4>}, {transform_indices = @transform_1, window_bounds = array<i64: 1, 4, 128>}, {transform_indices = @transform_2, window_bounds = array<i64: 1, 1, 128>}, {transform_indices = @transform_3, window_bounds = array<i64: 1, 1, 128>}]} {
    %c0 = arith.constant 0 : index
    %c0_0 = arith.constant 0 : index
    %c0_1 = arith.constant 0 : index
    %0 = vector.load %arg2[%c0, %c0_0, %c0_1] : memref<1x4x128xf32, #tpu.memory_space<vmem>>, vector<1x4x128xf32>
    %1 = vector.shape_cast %0 : vector<1x4x128xf32> to vector<4x128xf32>
    %2 = vector.extract_strided_slice %1 {offsets = [0, 0], sizes = [1, 128], strides = [1, 1]} : vector<4x128xf32> to vector<1x128xf32>
    %3 = vector.extract_strided_slice %1 {offsets = [1, 0], sizes = [1, 128], strides = [1, 1]} : vector<4x128xf32> to vector<1x128xf32>
    %4 = vector.extract_strided_slice %1 {offsets = [2, 0], sizes = [1, 128], strides = [1, 1]} : vector<4x128xf32> to vector<1x128xf32>
    %5 = vector.extract_strided_slice %1 {offsets = [3, 0], sizes = [1, 128], strides = [1, 1]} : vector<4x128xf32> to vector<1x128xf32>
    %6 = arith.subf %4, %2 : vector<1x128xf32>
    %7 = arith.subf %5, %3 : vector<1x128xf32>
    %8 = arith.mulf %6, %7 : vector<1x128xf32>
    %c0_2 = arith.constant 0 : index
    %c0_3 = arith.constant 0 : index
    %c0_4 = arith.constant 0 : index
    %9 = vector.load %arg3[%c0_2, %c0_3, %c0_4] : memref<1x1x128xf32, #tpu.memory_space<vmem>>, vector<1x1x128xf32>
    %10 = vector.shape_cast %9 : vector<1x1x128xf32> to vector<1x128xf32>
    %cst = arith.constant 5.000000e-02 : f32
    %11 = vector.broadcast %cst : f32 to vector<1x128xf32>
    %12 = arith.cmpf ogt, %10, %11 : vector<1x128xf32>
    %13 = arith.extui %12 : vector<1x128xi1> to vector<1x128xi32>
    %14 = arith.sitofp %13 : vector<1x128xi32> to vector<1x128xf32>
    %15 = tpu.iota {dimensions = array<i32: 1>} : vector<8x128xi32>
    %16 = tpu.iota {dimensions = array<i32: 0>} : vector<8x128xi32>
    %c0_i32 = arith.constant 0 : i32
    %c16_i32 = arith.constant 16 : i32
    %17 = arith.addi %c0_i32, %c16_i32 : i32
    %c1_i32 = arith.constant 1 : i32
    %18 = scf.for %arg5 = %c0_i32 to %17 step %c1_i32 iter_args(%arg6 = %14) -> (vector<1x128xf32>)  : i32 {
      %c8_i32 = arith.constant 8 : i32
      %22 = arith.muli %arg5, %c8_i32 : i32
      %23 = tpu.assume_multiple %22, 8 : i32
      %c0_9 = arith.constant 0 : index
      %24 = arith.index_cast %23 : i32 to index
      %c0_10 = arith.constant 0 : index
      %25 = vector.load %arg1[%c0_9, %24, %c0_10] : memref<1x128x4xf32, #tpu.memory_space<vmem>>, vector<1x8x4xf32>
      %26 = vector.shape_cast %25 : vector<1x8x4xf32> to vector<8x4xf32>
      %27 = vector.extract_strided_slice %26 {offsets = [0, 0], sizes = [8, 1], strides = [1, 1]} : vector<8x4xf32> to vector<8x1xf32>
      %28 = vector.extract_strided_slice %26 {offsets = [0, 1], sizes = [8, 1], strides = [1, 1]} : vector<8x4xf32> to vector<8x1xf32>
      %29 = vector.extract_strided_slice %26 {offsets = [0, 2], sizes = [8, 1], strides = [1, 1]} : vector<8x4xf32> to vector<8x1xf32>
      %30 = vector.extract_strided_slice %26 {offsets = [0, 3], sizes = [8, 1], strides = [1, 1]} : vector<8x4xf32> to vector<8x1xf32>
      %31 = arith.subf %29, %27 : vector<8x1xf32>
      %32 = arith.subf %30, %28 : vector<8x1xf32>
      %33 = arith.mulf %31, %32 : vector<8x1xf32>
      %34 = vector.broadcast %29 : vector<8x1xf32> to vector<8x128xf32>
      %35 = vector.broadcast %4 : vector<1x128xf32> to vector<8x128xf32>
      %36 = arith.minimumf %34, %35 : vector<8x128xf32>
      %37 = vector.broadcast %27 : vector<8x1xf32> to vector<8x128xf32>
      %38 = vector.broadcast %2 : vector<1x128xf32> to vector<8x128xf32>
      %39 = arith.maximumf %37, %38 : vector<8x128xf32>
      %40 = arith.subf %36, %39 : vector<8x128xf32>
      %cst_11 = arith.constant 0.000000e+00 : f32
      %41 = vector.broadcast %cst_11 : f32 to vector<8x128xf32>
      %42 = arith.maximumf %40, %41 : vector<8x128xf32>
      %43 = vector.broadcast %30 : vector<8x1xf32> to vector<8x128xf32>
      %44 = vector.broadcast %5 : vector<1x128xf32> to vector<8x128xf32>
      %45 = arith.minimumf %43, %44 : vector<8x128xf32>
      %46 = vector.broadcast %28 : vector<8x1xf32> to vector<8x128xf32>
      %47 = vector.broadcast %3 : vector<1x128xf32> to vector<8x128xf32>
      %48 = arith.maximumf %46, %47 : vector<8x128xf32>
      %49 = arith.subf %45, %48 : vector<8x128xf32>
      %cst_12 = arith.constant 0.000000e+00 : f32
      %50 = vector.broadcast %cst_12 : f32 to vector<8x128xf32>
      %51 = arith.maximumf %49, %50 : vector<8x128xf32>
      %52 = arith.mulf %42, %51 : vector<8x128xf32>
      %53 = vector.broadcast %33 : vector<8x1xf32> to vector<8x128xf32>
      %54 = vector.broadcast %8 : vector<1x128xf32> to vector<8x128xf32>
      %55 = arith.addf %53, %54 : vector<8x128xf32>
      %56 = arith.subf %55, %52 : vector<8x128xf32>
      %57 = vector.broadcast %23 : i32 to vector<8x128xi32>
      %58 = arith.addi %16, %57 : vector<8x128xi32>
      %cst_13 = arith.constant 5.000000e-01 : f32
      %59 = vector.broadcast %cst_13 : f32 to vector<8x128xf32>
      %60 = arith.mulf %59, %56 : vector<8x128xf32>
      %61 = arith.cmpf ogt, %52, %60 : vector<8x128xf32>
      %62 = arith.cmpi sgt, %15, %58 : vector<8x128xi32>
      %63 = arith.andi %61, %62 : vector<8x128xi1>
      %64 = arith.extui %63 : vector<8x128xi1> to vector<8x128xi32>
      %65 = arith.sitofp %64 : vector<8x128xi32> to vector<8x128xf32>
      %66 = arith.cmpi eq, %15, %58 : vector<8x128xi32>
      %cst_14 = arith.constant 0.000000e+00 : f32
      %67 = vector.shape_cast %arg6 : vector<1x128xf32> to vector<1x128xf32>
      %68 = vector.broadcast %67 : vector<1x128xf32> to vector<8x128xf32>
      %69 = vector.broadcast %cst_14 : f32 to vector<8x128xf32>
      %70 = arith.select %66, %68, %69 : vector<8x128xi1>, vector<8x128xf32>
      %cst_15 = arith.constant dense<0.000000e+00> : vector<8xf32>
      %71 = vector.multi_reduction <add>, %70, %cst_15 [1] : vector<8x128xf32> to vector<8xf32>
      %72 = vector.shape_cast %71 : vector<8xf32> to vector<8x1xf32>
      %73 = arith.extui %66 : vector<8x128xi1> to vector<8x128xi32>
      %74 = arith.sitofp %73 : vector<8x128xi32> to vector<8x128xf32>
      %cst_16 = arith.constant dense<0.000000e+00> : vector<8x8xf32>
      %75 = tpu.matmul %74, %65, %cst_16 {dimension_numbers = #tpu.dot_dimension_numbers<[1], [1], [0], [0], [0, 0, 1, 0], [], []>} : vector<8x128xf32>, vector<8x128xf32>, vector<8x8xf32> -> vector<8x8xf32>
      %76 = vector.extract_strided_slice %72 {offsets = [0, 0], sizes = [1, 1], strides = [1, 1]} : vector<8x1xf32> to vector<1x1xf32>
      %cst_17 = arith.constant 5.000000e-01 : f32
      %77 = vector.broadcast %cst_17 : f32 to vector<1x1xf32>
      %78 = arith.cmpf ogt, %76, %77 : vector<1x1xf32>
      %79 = vector.extract_strided_slice %75 {offsets = [0, 0], sizes = [8, 1], strides = [1, 1]} : vector<8x8xf32> to vector<8x1xf32>
      %cst_18 = arith.constant 5.000000e-01 : f32
      %80 = vector.broadcast %cst_18 : f32 to vector<8x1xf32>
      %81 = arith.cmpf ogt, %79, %80 : vector<8x1xf32>
      %82 = vector.broadcast %78 : vector<1x1xi1> to vector<8x1xi1>
      %83 = arith.andi %81, %82 : vector<8x1xi1>
      %cst_19 = arith.constant 0.000000e+00 : f32
      %84 = vector.broadcast %cst_19 : f32 to vector<8x1xf32>
      %85 = arith.select %83, %84, %72 : vector<8x1xi1>, vector<8x1xf32>
      %86 = vector.extract_strided_slice %63 {offsets = [0, 0], sizes = [1, 128], strides = [1, 1]} : vector<8x128xi1> to vector<1x128xi1>
      %87 = vector.broadcast %78 : vector<1x1xi1> to vector<1x128xi1>
      %88 = arith.andi %86, %87 : vector<1x128xi1>
      %cst_20 = arith.constant 0.000000e+00 : f32
      %89 = vector.broadcast %cst_20 : f32 to vector<1x128xf32>
      %90 = arith.select %88, %89, %arg6 : vector<1x128xi1>, vector<1x128xf32>
      %91 = vector.extract_strided_slice %85 {offsets = [1, 0], sizes = [1, 1], strides = [1, 1]} : vector<8x1xf32> to vector<1x1xf32>
      %cst_21 = arith.constant 5.000000e-01 : f32
      %92 = vector.broadcast %cst_21 : f32 to vector<1x1xf32>
      %93 = arith.cmpf ogt, %91, %92 : vector<1x1xf32>
      %94 = vector.extract_strided_slice %75 {offsets = [0, 1], sizes = [8, 1], strides = [1, 1]} : vector<8x8xf32> to vector<8x1xf32>
      %cst_22 = arith.constant 5.000000e-01 : f32
      %95 = vector.broadcast %cst_22 : f32 to vector<8x1xf32>
      %96 = arith.cmpf ogt, %94, %95 : vector<8x1xf32>
      %97 = vector.broadcast %93 : vector<1x1xi1> to vector<8x1xi1>
      %98 = arith.andi %96, %97 : vector<8x1xi1>
      %cst_23 = arith.constant 0.000000e+00 : f32
      %99 = vector.broadcast %cst_23 : f32 to vector<8x1xf32>
      %100 = arith.select %98, %99, %85 : vector<8x1xi1>, vector<8x1xf32>
      %101 = vector.extract_strided_slice %63 {offsets = [1, 0], sizes = [1, 128], strides = [1, 1]} : vector<8x128xi1> to vector<1x128xi1>
      %102 = vector.broadcast %93 : vector<1x1xi1> to vector<1x128xi1>
      %103 = arith.andi %101, %102 : vector<1x128xi1>
      %cst_24 = arith.constant 0.000000e+00 : f32
      %104 = vector.broadcast %cst_24 : f32 to vector<1x128xf32>
      %105 = arith.select %103, %104, %90 : vector<1x128xi1>, vector<1x128xf32>
      %106 = vector.extract_strided_slice %100 {offsets = [2, 0], sizes = [1, 1], strides = [1, 1]} : vector<8x1xf32> to vector<1x1xf32>
      %cst_25 = arith.constant 5.000000e-01 : f32
      %107 = vector.broadcast %cst_25 : f32 to vector<1x1xf32>
      %108 = arith.cmpf ogt, %106, %107 : vector<1x1xf32>
      %109 = vector.extract_strided_slice %75 {offsets = [0, 2], sizes = [8, 1], strides = [1, 1]} : vector<8x8xf32> to vector<8x1xf32>
      %cst_26 = arith.constant 5.000000e-01 : f32
      %110 = vector.broadcast %cst_26 : f32 to vector<8x1xf32>
      %111 = arith.cmpf ogt, %109, %110 : vector<8x1xf32>
      %112 = vector.broadcast %108 : vector<1x1xi1> to vector<8x1xi1>
      %113 = arith.andi %111, %112 : vector<8x1xi1>
      %cst_27 = arith.constant 0.000000e+00 : f32
      %114 = vector.broadcast %cst_27 : f32 to vector<8x1xf32>
      %115 = arith.select %113, %114, %100 : vector<8x1xi1>, vector<8x1xf32>
      %116 = vector.extract_strided_slice %63 {offsets = [2, 0], sizes = [1, 128], strides = [1, 1]} : vector<8x128xi1> to vector<1x128xi1>
      %117 = vector.broadcast %108 : vector<1x1xi1> to vector<1x128xi1>
      %118 = arith.andi %116, %117 : vector<1x128xi1>
      %cst_28 = arith.constant 0.000000e+00 : f32
      %119 = vector.broadcast %cst_28 : f32 to vector<1x128xf32>
      %120 = arith.select %118, %119, %105 : vector<1x128xi1>, vector<1x128xf32>
      %121 = vector.extract_strided_slice %115 {offsets = [3, 0], sizes = [1, 1], strides = [1, 1]} : vector<8x1xf32> to vector<1x1xf32>
      %cst_29 = arith.constant 5.000000e-01 : f32
      %122 = vector.broadcast %cst_29 : f32 to vector<1x1xf32>
      %123 = arith.cmpf ogt, %121, %122 : vector<1x1xf32>
      %124 = vector.extract_strided_slice %75 {offsets = [0, 3], sizes = [8, 1], strides = [1, 1]} : vector<8x8xf32> to vector<8x1xf32>
      %cst_30 = arith.constant 5.000000e-01 : f32
      %125 = vector.broadcast %cst_30 : f32 to vector<8x1xf32>
      %126 = arith.cmpf ogt, %124, %125 : vector<8x1xf32>
      %127 = vector.broadcast %123 : vector<1x1xi1> to vector<8x1xi1>
      %128 = arith.andi %126, %127 : vector<8x1xi1>
      %cst_31 = arith.constant 0.000000e+00 : f32
      %129 = vector.broadcast %cst_31 : f32 to vector<8x1xf32>
      %130 = arith.select %128, %129, %115 : vector<8x1xi1>, vector<8x1xf32>
      %131 = vector.extract_strided_slice %63 {offsets = [3, 0], sizes = [1, 128], strides = [1, 1]} : vector<8x128xi1> to vector<1x128xi1>
      %132 = vector.broadcast %123 : vector<1x1xi1> to vector<1x128xi1>
      %133 = arith.andi %131, %132 : vector<1x128xi1>
      %cst_32 = arith.constant 0.000000e+00 : f32
      %134 = vector.broadcast %cst_32 : f32 to vector<1x128xf32>
      %135 = arith.select %133, %134, %120 : vector<1x128xi1>, vector<1x128xf32>
      %136 = vector.extract_strided_slice %130 {offsets = [4, 0], sizes = [1, 1], strides = [1, 1]} : vector<8x1xf32> to vector<1x1xf32>
      %cst_33 = arith.constant 5.000000e-01 : f32
      %137 = vector.broadcast %cst_33 : f32 to vector<1x1xf32>
      %138 = arith.cmpf ogt, %136, %137 : vector<1x1xf32>
      %139 = vector.extract_strided_slice %75 {offsets = [0, 4], sizes = [8, 1], strides = [1, 1]} : vector<8x8xf32> to vector<8x1xf32>
      %cst_34 = arith.constant 5.000000e-01 : f32
      %140 = vector.broadcast %cst_34 : f32 to vector<8x1xf32>
      %141 = arith.cmpf ogt, %139, %140 : vector<8x1xf32>
      %142 = vector.broadcast %138 : vector<1x1xi1> to vector<8x1xi1>
      %143 = arith.andi %141, %142 : vector<8x1xi1>
      %cst_35 = arith.constant 0.000000e+00 : f32
      %144 = vector.broadcast %cst_35 : f32 to vector<8x1xf32>
      %145 = arith.select %143, %144, %130 : vector<8x1xi1>, vector<8x1xf32>
      %146 = vector.extract_strided_slice %63 {offsets = [4, 0], sizes = [1, 128], strides = [1, 1]} : vector<8x128xi1> to vector<1x128xi1>
      %147 = vector.broadcast %138 : vector<1x1xi1> to vector<1x128xi1>
      %148 = arith.andi %146, %147 : vector<1x128xi1>
      %cst_36 = arith.constant 0.000000e+00 : f32
      %149 = vector.broadcast %cst_36 : f32 to vector<1x128xf32>
      %150 = arith.select %148, %149, %135 : vector<1x128xi1>, vector<1x128xf32>
      %151 = vector.extract_strided_slice %145 {offsets = [5, 0], sizes = [1, 1], strides = [1, 1]} : vector<8x1xf32> to vector<1x1xf32>
      %cst_37 = arith.constant 5.000000e-01 : f32
      %152 = vector.broadcast %cst_37 : f32 to vector<1x1xf32>
      %153 = arith.cmpf ogt, %151, %152 : vector<1x1xf32>
      %154 = vector.extract_strided_slice %75 {offsets = [0, 5], sizes = [8, 1], strides = [1, 1]} : vector<8x8xf32> to vector<8x1xf32>
      %cst_38 = arith.constant 5.000000e-01 : f32
      %155 = vector.broadcast %cst_38 : f32 to vector<8x1xf32>
      %156 = arith.cmpf ogt, %154, %155 : vector<8x1xf32>
      %157 = vector.broadcast %153 : vector<1x1xi1> to vector<8x1xi1>
      %158 = arith.andi %156, %157 : vector<8x1xi1>
      %cst_39 = arith.constant 0.000000e+00 : f32
      %159 = vector.broadcast %cst_39 : f32 to vector<8x1xf32>
      %160 = arith.select %158, %159, %145 : vector<8x1xi1>, vector<8x1xf32>
      %161 = vector.extract_strided_slice %63 {offsets = [5, 0], sizes = [1, 128], strides = [1, 1]} : vector<8x128xi1> to vector<1x128xi1>
      %162 = vector.broadcast %153 : vector<1x1xi1> to vector<1x128xi1>
      %163 = arith.andi %161, %162 : vector<1x128xi1>
      %cst_40 = arith.constant 0.000000e+00 : f32
      %164 = vector.broadcast %cst_40 : f32 to vector<1x128xf32>
      %165 = arith.select %163, %164, %150 : vector<1x128xi1>, vector<1x128xf32>
      %166 = vector.extract_strided_slice %160 {offsets = [6, 0], sizes = [1, 1], strides = [1, 1]} : vector<8x1xf32> to vector<1x1xf32>
      %cst_41 = arith.constant 5.000000e-01 : f32
      %167 = vector.broadcast %cst_41 : f32 to vector<1x1xf32>
      %168 = arith.cmpf ogt, %166, %167 : vector<1x1xf32>
      %169 = vector.extract_strided_slice %75 {offsets = [0, 6], sizes = [8, 1], strides = [1, 1]} : vector<8x8xf32> to vector<8x1xf32>
      %cst_42 = arith.constant 5.000000e-01 : f32
      %170 = vector.broadcast %cst_42 : f32 to vector<8x1xf32>
      %171 = arith.cmpf ogt, %169, %170 : vector<8x1xf32>
      %172 = vector.broadcast %168 : vector<1x1xi1> to vector<8x1xi1>
      %173 = arith.andi %171, %172 : vector<8x1xi1>
      %cst_43 = arith.constant 0.000000e+00 : f32
      %174 = vector.broadcast %cst_43 : f32 to vector<8x1xf32>
      %175 = arith.select %173, %174, %160 : vector<8x1xi1>, vector<8x1xf32>
      %176 = vector.extract_strided_slice %63 {offsets = [6, 0], sizes = [1, 128], strides = [1, 1]} : vector<8x128xi1> to vector<1x128xi1>
      %177 = vector.broadcast %168 : vector<1x1xi1> to vector<1x128xi1>
      %178 = arith.andi %176, %177 : vector<1x128xi1>
      %cst_44 = arith.constant 0.000000e+00 : f32
      %179 = vector.broadcast %cst_44 : f32 to vector<1x128xf32>
      %180 = arith.select %178, %179, %165 : vector<1x128xi1>, vector<1x128xf32>
      %181 = vector.extract_strided_slice %175 {offsets = [7, 0], sizes = [1, 1], strides = [1, 1]} : vector<8x1xf32> to vector<1x1xf32>
      %cst_45 = arith.constant 5.000000e-01 : f32
      %182 = vector.broadcast %cst_45 : f32 to vector<1x1xf32>
      %183 = arith.cmpf ogt, %181, %182 : vector<1x1xf32>
      %184 = vector.extract_strided_slice %63 {offsets = [7, 0], sizes = [1, 128], strides = [1, 1]} : vector<8x128xi1> to vector<1x128xi1>
      %185 = vector.broadcast %183 : vector<1x1xi1> to vector<1x128xi1>
      %186 = arith.andi %184, %185 : vector<1x128xi1>
      %cst_46 = arith.constant 0.000000e+00 : f32
      %187 = vector.broadcast %cst_46 : f32 to vector<1x128xf32>
      %188 = arith.select %186, %187, %180 : vector<1x128xi1>, vector<1x128xf32>
      scf.yield %188 : vector<1x128xf32>
    }
    %c16_i32_5 = arith.constant 16 : i32
    %c0_6 = arith.constant 0 : index
    %c0_7 = arith.constant 0 : index
    %c0_8 = arith.constant 0 : index
    %19 = vector.load %arg4[%c0_6, %c0_7, %c0_8] : memref<1x1x128xf32, #tpu.memory_space<vmem>>, vector<1x1x128xf32>
    %20 = vector.shape_cast %19 : vector<1x1x128xf32> to vector<1x128xf32>
    %21 = vector.shape_cast %18 : vector<1x128xf32> to vector<1x1x128xf32>
    tpu.vector_store %arg4[%c0_6, %c0_7, %c0_8], %21 {strides = array<i32>} : memref<1x1x128xf32, #tpu.memory_space<vmem>>, vector<1x1x128xf32>,
    return
  }
  func.func @transform_0(%arg0: i32) -> (i32, i32, i32) {
    %c0_i32 = arith.constant 0 : i32
    %c0_i32_0 = arith.constant 0 : i32
    %c0_i32_1 = arith.constant 0 : i32
    return %arg0, %c0_i32, %c0_i32_0 : i32, i32, i32
  }
  func.func @transform_1(%arg0: i32) -> (i32, i32, i32) {
    %c0_i32 = arith.constant 0 : i32
    %c0_i32_0 = arith.constant 0 : i32
    %c0_i32_1 = arith.constant 0 : i32
    return %arg0, %c0_i32, %c0_i32_0 : i32, i32, i32
  }
  func.func @transform_2(%arg0: i32) -> (i32, i32, i32) {
    %c0_i32 = arith.constant 0 : i32
    %c0_i32_0 = arith.constant 0 : i32
    %c0_i32_1 = arith.constant 0 : i32
    return %arg0, %c0_i32, %c0_i32_0 : i32, i32, i32
  }
  func.func @transform_3(%arg0: i32) -> (i32, i32, i32) {
    %c0_i32 = arith.constant 0 : i32
    %c0_i32_0 = arith.constant 0 : i32
    %c0_i32_1 = arith.constant 0 : i32
    return %arg0, %c0_i32, %c0_i32_0 : i32, i32, i32
  }
}

</mosaic_0001>

<bundles_post_ra>
// kernel: tpu_custom_call.1
= control target key start
LH: loop header
LB: loop body
LE: loop exit
PB: predicated region body
PF: predicated region fallthrough
CT: control target
= control target key end

     0   :  { %8 = vsyncpa [#allocation3], 0  ;;  %s1129_s0 = inlined_call_operand.vmem [shape: f32[2,128,4], index: 0, kind: input, shape index: {}]   ;;  %s1130_s1 = inlined_call_operand.vmem [shape: f32[2,4,128], index: 1, kind: input, shape index: {}]   ;;  %s1131_s2 = inlined_call_operand.vmem [shape: f32[2,1,128], index: 2, kind: input, shape index: {}]   ;;  %s1132_s3 = inlined_call_operand.hbm [shape: f32[2,1,128], index: 3, kind: output, shape index: {}]  }
   0x1   :  { %10 = vsyncpa [#allocation3 + $0x1], 0  ;;  %s879_s12 = smov 0   ;;  %s881_s13 = smov 0  }
   0x2   :  { %s883_s14 = smov 0   ;;  %s885_s15 = smov 0  }
   0x3 LB: > { %s900_s16 = sadd.s32 4294967295, %s834_s15   ;;  %s659_s17 = sadd.s32 4294967294, %s834_s15   ;;  %s834_s15 = sphi %s885_s15, %s1141_s15   ;;  %s830_s14 = sphi %s883_s14, %s1140_s14   ;;  %s826_s13 = sphi %s881_s13, %s1139_s13   ;;  %s822_s12 = sphi %s879_s12, %s1138_s12  }
   0x4   : > { %s904_s18 = sadd.s32 1, %s834_s15   ;;  %s101_s19 = sadd.s32 1, %s830_s14 }
   0x5   : > { %s98_s20 = ssub.s32 %s834_s15, %s904_s18  ;;  %p111_p0 = scmp.ne.s32.totalorder %s830_s14, %s826_s13 }
   0x6   : > { %p99_p1 = scmp.eq.s32.totalorder %s98_s20, 0  ;;  %p112_p2 = scmp.eq.s32.totalorder %s900_s16, 1 }
   0x7   : > { %p117_p3 = scmp.ne.s32.totalorder %s826_s13, %s822_s12  ;;  %p118_p4 = scmp.eq.s32.totalorder %s659_s17, 1 }
   0x8   : > { %s915_s21 = scalar_select %p99_p1, %s830_s14, %s101_s19  }
   0x9   : > { %p917_p5 = por %p112_p2, %p111_p0  ;;  %p921_p6 = por %p118_p4, %p117_p3 }
   0xa   : > { %p662_p7 = scmp.ge.s32.totalorder %s834_s15, 1  ;;  %p157_p8 = scmp.lt.s32.totalorder %s834_s15, 3 }
   0xc   : > { %p158_p9 = pnand %p662_p7, %p157_p8 }
   0xd   : > { %s185_s24 = sand.u32 (!%p158_p9), 1, %s826_s13   ;;  %p187_p10 = scmp.lt.s32.totalorder (!%p158_p9), %s900_s16, 1  ;;  %v212_v0 = vlaneseq (!%p158_p9)  ;;  %v844_v7 = vmov (!%p158_p9), 0.0  }
   0xe   : > { %161 = sbr.rel (%p158_p9) target bundleno = 1527 (0x5f7), region = 32  ;;  %s953_s10 = scalar_lea.vmem (!%p158_p9), [#allocation2], %s185_s24 }
   0xf   : > { %v930_v1 = vand.u32 (!%p158_p9), 127, %v212_v0  ;;  %v932_v2 = vshrl.u32 (!%p158_p9), %v212_v0, 7  ;;  %s957_s11 = smov (!%p158_p9), 0  }
  0x15   : > { %s188_s25 = scalar_select %p187_p10, %s900_s16, 1 }
  0x17   : > { %s675_s26 = sshll.u32 %s188_s25, 7  ;;  %s665_s27 = sshll.u32 %s188_s25, 2 }
  0x18   : > { %s937_s30 = scalar_lea.vmem %s1129_s0, %s675_s26  ;;  %s195_s6 = scalar_lea.vmem %s1130_s1, %s665_s27 }
  0x19   : > { %s198_s9 = scalar_lea.vmem %s1131_s2, %s188_s25  ;;  %v945_v3 = vld [vmem:[%s195_s6] sm:$0xf] }
  0x1a   : > { %v201_v4 = vrot.slane %v945_v3, 6  ;;  %v208_v5 = vld [vmem:[%s198_s9] sm:$0x1] }
  0x1b   : > { %vm209_vm0 = vcmp.gt.f32.partialorder %v208_v5, 0.05 }
  0x1c   : > { %v203_v6 = vsub.f32 %v945_v3, %v201_v4  ;;  %v666_v8 = vsel %vm209_vm0, 1.0, %v844_v7  }
  0x1e   : > { %v205_v9 = vrot.slane %v203_v6, 1 }
  0x20   : > { %v949_v10 = vmul.f32 %v205_v9, %v203_v6 }
  0x21 LB: >> { %v845_v11 = vmov 3   ;;  %v846_v12 = vmov 2   ;;  %s667_s17 = sshll.u32 %s842_s11, 3  ;;  %s847_s20 = smov 2   ;;  %v848_v14 = vmov 0   ;;  %v849_v15 = vmov 1   ;;  %s842_s11 = sphi %s957_s11, %s221_s11   ;;  %v838_v8 = vphi %v666_v8, %v1137_v8  }
  0x22   : >> { %754 = vset.pattern.permute.xlu0 %v845_v11  ;;  %752 = vset.pattern.permute.xlu1 %v846_v12  ;;  %s224_s19 = scalar_lea.vmem %s937_s30, %s667_s17  ;;  %s850_s25 = smov 127   ;;  %v288_v18 = vstv %s667_s17  ;;  %v251_v19 = vsub.s32 0, %v932_v2  ;;  %v851_v25 = vmov 0.0   ;;  %vm852_vm2 = vmmov 0  }
  0x23   : >> { %v225_v13 = vld [vmem:[%s224_s19] sm:$0xff]  ;;  %v289_v20 = vadd.s32 %v288_v18, %v932_v2  ;;  %678 = vmatprep.subr.mxu0 %v851_v25  ;;  %680 = vmatprep.mubr.msk.f32.mxu0 %vm852_vm2, %v851_v25  ;;  %v242_v28 = vsub.s32 2, %v932_v2  ;;  %v271_v29 = vsub.s32 1, %v932_v2  ;;  %v262_v30 = vsub.s32 3, %v932_v2  ;;  %s854_s26 = smov 1   ;;  %s221_s11 = sadd.s32 1, %s842_s11  }
  0x24   : >> { %227 = vrot.lane.b32.xlu0 %v225_v13, %s847_s20  ;;  %237 = vperm.xlu1 %752, %v225_v13   ;;  %v300_v21 = vrot.slane %v838_v8, %v251_v19  ;;  %v252_v32 = vrot.slane %v945_v3, %v251_v19  ;;  %v853_v52 = vmov 1.0   ;;  %p218_p11 = scmp.ge.s32.totalorder %s221_s11, 16  }
  0x25   : >> { %vm296_vm1 = vcmp.eq.s32.totalorder %v930_v1, %v289_v20  ;;  %v243_v31 = vrot.slane %v945_v3, %v242_v28  ;;  %v272_v33 = vrot.slane %v945_v3, %v271_v29  ;;  %v263_v34 = vrot.slane %v945_v3, %v262_v30  ;;  %s672_s27 = sshll.u32 (%p218_p11), %s900_s16, 4  ;;  %s573_s5 = sshll.u32 (%p218_p11), %s953_s10, 4  ;;  %s574_s5 = int_to_ptr.vmem [resolvable:$true] %s573_s5 }
  0x26   : >> { %v301_v22 = vsel %vm296_vm1, %v300_v21, 0.0  ;;  %v285_v45 = vrot.slane %v949_v10, %v242_v28  ;;  %vm292_vm3 = vcmp.gt.s32.totalorder %v930_v1, %v289_v20  ;;  %v471_v20 = vsub.s32 4, %v932_v2  ;;  %s1090_s4 = scalar_lea.hbm (%p218_p11), %s1132_s3, %s672_s27  ;;  %s561_s6 = scalar_lea.sflag (%p218_p11), [#allocation3], %s185_s24 }
  0x27   : > { %s764_s7 = scalar_lea.vmem (%p218_p11), %s574_s5, 16  ;;  %s858_s30 = smov (%p218_p11), [#allocation2]  }
  0x28   : >> { %753 = vset.pattern.permute.xlu1 %v848_v14  ;;  %p765_p12 = scmp.ne.s32.totalorder (%p218_p11), %s574_s5, %s764_s7  ;;  %s768_s8 = sshll.u32 (%p218_p11), %s858_s30, 4  ;;  %s769_s8 = int_to_ptr.vmem [resolvable:$false] %s768_s8 }
  0x29   : >> { %246 = vperm.xlu1 %753, %v225_v13   ;;  %s770_s9 = scalar_lea.vmem (%p218_p11), %s769_s8, 32  ;;  %p771_p1 = scmp.lt.s32.totalorder (%p218_p11), %s574_s5, %s769_s8 }
  0x2a   : > { %p766_p13 = pnand (%p218_p11), %p765_p12, %p917_p5  ;;  %p772_p2 = scmp.lt.s32.totalorder (%p218_p11), %s770_s9, %s764_s7 }
  0x2c   : > { %p767_p0 = pneg (%p218_p11), %p766_p13  ;;  %p773_p3 = por (%p218_p11), %p772_p2, %p771_p1 }
  0x2d   : >> { %755 = vset.pattern.permute.xlu1 %v849_v15 }
  0x2e   : >> { %266 = vperm.xlu1 %755, %v225_v13   ;;  %p774_p4 = pnand (%p218_p11), %p773_p3, %p767_p0 }
  0x32   : >> { %756 = vset.pattern.permute.xlu1 %v846_v12 }
  0x96   : >> { %v228_v16 = vpop.permute.xlu0 %227 }
  0x97   : >> { %v230_v17 = vsub.f32 %v225_v13, %v228_v16 }
  0x99   : >> { %232 = vrot.lane.b32.xlu0 %v230_v17, %s850_s25 }
  0x9d   : >> { %257 = vperm.xlu0 %754, %v225_v13  }
  0xa3   : >> { %v238_v26 = vpop.permute.xlu1 %237 }
  0xa4   : >> { %v244_v37 = vmin.f32 %v238_v26, %v243_v31 }
  0xa8   : >> { %v247_v27 = vpop.permute.xlu1 %246 }
  0xa9   : >> { %v253_v38 = vmax.f32 %v247_v27, %v252_v32  ;;  %v497_v27 = vsub.s32 5, %v932_v2  ;;  %v855_v32 = vmov 5  }
  0xab   : >> { %v254_v41 = vsub.f32 %v244_v37, %v253_v38 }
  0xad   : >> { %v267_v35 = vpop.permute.xlu1 %266  ;;  %v255_v43 = vmax.f32 %v254_v41, 0.0  ;;  %v857_v41 = vmov 4  }
  0xae   : >> { %v273_v39 = vmax.f32 %v267_v35, %v272_v33  ;;  %v523_v35 = vsub.s32 6, %v932_v2 }
  0xbc   : >> { %302 = vadd.xlane.f32.xlu0 %v301_v22 }
 0x10b   : >> { %v233_v23 = vpop.permute.xlu0 %232 }
 0x10c   : >> { %v235_v24 = vmul.f32 %v233_v23, %v230_v17 }
 0x10e   : >> { %279 = vperm.xlu1 %756, %v235_v24  }
 0x112   : >> { %757 = vset.pattern.permute.xlu1 %v848_v14 }
 0x11c   : >> { %v258_v36 = vpop.permute.xlu0 %257 }
 0x11d   : >> { %v264_v40 = vmin.f32 %v258_v36, %v263_v34 }
 0x11f   : >> { %v274_v42 = vsub.f32 %v264_v40, %v273_v39  ;;  %v856_v40 = vmov 6  }
 0x121   : >> { %v275_v44 = vmax.f32 %v274_v42, 0.0 }
 0x123   : >> { %v276_v47 = vmul.f32 %v275_v44, %v255_v43 }
 0x149   : >> { %v997_v53 = vpop.xlane.xlu0 %302 }
 0x14a   : >> { %vm376_vm6 = vcmp.gt.f32.partialorder %v997_v53, 0.5 }
 0x14b   : >> { %v378_v54 = vsel %vm376_vm6, 1, %v848_v14 }
 0x14c   : >> { %v382_v55 = vrot.slane %v378_v54, %v251_v19 }
 0x14e   : >> { %vm383_vm7 = vcmp.eq.s32.totalorder %v382_v55, 1 }
 0x18d   : >> { %v280_v46 = vpop.permute.xlu1 %279 }
 0x18e   : >> { %v286_v48 = vadd.f32 %v285_v45, %v280_v46 }
 0x190   : >> { %v287_v49 = vsub.f32 %v286_v48, %v276_v47 }
 0x192   : >> { %v290_v50 = vmul.f32 0.5, %v287_v49 }
 0x194   : >> { %vm291_vm4 = vcmp.gt.f32.partialorder %v276_v47, %v290_v50 }
 0x195   : >> { %vm989_vm5 = vmand %vm291_vm4, %vm292_vm3 }
 0x196   : >> { %679 = vmatpush3.xpose.msk.msra.mxu0 %vm989_vm5, %v853_v52 }
 0x199   : >> { %681 = vmatmul.mubr.msk.f32.vlgmr.msra.gmra.mrb[0].mxu0 %vm296_vm1, %v853_v52 }
 0x26c   : >> { %v1003_v56 = vpop.f32.mrb[0].mxu0 }
 0x26d   : >> { %vm377_vm8 = vcmp.gt.f32.partialorder %v1003_v56, 0.5  ;;  %v682_v57 = vpop.f32.mrb[1].mxu0 }
 0x26e   : >> { %vm384_vm9 = vmand %vm377_vm8, %vm383_vm7 }
 0x26f   : >> { %v385_v58 = vsel %vm384_vm9, 0.0, %v997_v53 }
 0x270   : >> { %vm389_vm10 = vcmp.gt.f32.partialorder %v385_v58, 0.5 }
 0x271   : >> { %v1010_v59 = vsel %vm389_vm10, 1, %v848_v14 }
 0x272   : >> { %v394_v60 = vrot.slane %v1010_v59, %v271_v29 }
 0x274   : >> { %vm395_vm11 = vcmp.eq.s32.totalorder %v394_v60, 1 }
 0x275   : >> { %v396_v61 = vsel %vm395_vm11, 1, %v848_v14 }
 0x276   : >> { %397 = vrot.lane.b32.xlu1 %v396_v61, %s854_s26 }
 0x27a   : >> { %402 = vrot.lane.b32.xlu1 %v385_v58, %s854_s26 }
 0x2e8   : >> { %v398_v62 = vpop.permute.xlu1 %397 }
 0x2e9   : >> { %vm399_vm12 = vcmp.ne.s32.totalorder %v398_v62, 0 }
 0x2ea   : >> { %vm400_vm13 = vmand %vm377_vm8, %vm399_vm12 }
 0x2ec   : >> { %v403_v63 = vpop.permute.xlu1 %402 }
 0x2ed   : >> { %v405_v0 = vsel %vm400_vm13, 0.0, %v403_v63 }
 0x2ee   : >> { %vm415_vm14 = vcmp.gt.f32.partialorder %v405_v0, 0.5 }
 0x2ef   : >> { %v1019_v4 = vsel %vm415_vm14, 1, %v848_v14 }
 0x2f0   : >> { %v420_v5 = vrot.slane %v1019_v4, %v242_v28 }
 0x2f2   : >> { %vm421_vm15 = vcmp.eq.s32.totalorder %v420_v5, 1 }
 0x2f3   : >> { %v422_v6 = vsel %vm421_vm15, 1, %v848_v14 }
 0x2f4   : >> { %423 = vrot.lane.b32.xlu1 %v422_v6, %s854_s26 }
 0x2f8   : >> { %428 = vrot.lane.b32.xlu1 %v405_v0, %s854_s26 }
 0x366   : >> { %v424_v7 = vpop.permute.xlu1 %423 }
 0x367   : >> { %vm425_vm0 = vcmp.ne.s32.totalorder %v424_v7, 0 }
 0x368   : >> { %vm426_vm1 = vmand %vm377_vm8, %vm425_vm0 }
 0x36a   : >> { %v429_v9 = vpop.permute.xlu1 %428 }
 0x36b   : >> { %v431_v11 = vsel %vm426_vm1, 0.0, %v429_v9 }
 0x36c   : >> { %vm441_vm2 = vcmp.gt.f32.partialorder %v431_v11, 0.5 }
 0x36d   : >> { %v442_v13 = vsel %vm441_vm2, 1, %v848_v14 }
 0x36e   : >> { %v446_v16 = vrot.slane %v442_v13, %v262_v30 }
 0x370   : >> { %vm447_vm3 = vcmp.eq.s32.totalorder %v446_v16, 1 }
 0x371   : >> { %v448_v17 = vsel %vm447_vm3, 1, %v848_v14 }
 0x372   : >> { %449 = vrot.lane.b32.xlu1 %v448_v17, %s854_s26 }
 0x376   : >> { %454 = vrot.lane.b32.xlu1 %v431_v11, %s854_s26 }
 0x3e4   : >> { %v450_v18 = vpop.permute.xlu1 %449 }
 0x3e5   : >> { %vm451_vm4 = vcmp.ne.s32.totalorder %v450_v18, 0 }
 0x3e6   : >> { %vm452_vm7 = vmand %vm377_vm8, %vm451_vm4 }
 0x3e8   : >> { %v455_v19 = vpop.permute.xlu1 %454 }
 0x3e9   : >> { %v457_v21 = vsel %vm452_vm7, 0.0, %v455_v19 }
 0x3ea   : >> { %vm467_vm9 = vcmp.gt.f32.partialorder %v457_v21, 0.5 }
 0x3eb   : >> { %v468_v22 = vsel %vm467_vm9, 1, %v848_v14  ;;  %vm387_vm9 = vmand %vm989_vm5, %vm376_vm6 }
 0x3ec   : >> { %v472_v23 = vrot.slane %v468_v22, %v471_v20 }
 0x3ee   : >> { %vm473_vm10 = vcmp.eq.s32.totalorder %v472_v23, 1 }
 0x3ef   : >> { %v474_v24 = vsel %vm473_vm10, 1, %v848_v14 }
 0x3f0   : >> { %475 = vrot.lane.b32.xlu1 %v474_v24, %s854_s26 }
 0x3f4   : >> { %480 = vrot.lane.b32.xlu1 %v457_v21, %s854_s26 }
 0x462   : >> { %v476_v25 = vpop.permute.xlu1 %475 }
 0x463   : >> { %vm477_vm11 = vcmp.ne.s32.totalorder %v476_v25, 0 }
 0x464   : >> { %vm478_vm12 = vmand %vm377_vm8, %vm477_vm11 }
 0x466   : >> { %v481_v26 = vpop.permute.xlu1 %480 }
 0x467   : >> { %v483_v28 = vsel %vm478_vm12, 0.0, %v481_v26 }
 0x468   : >> { %vm493_vm13 = vcmp.gt.f32.partialorder %v483_v28, 0.5  ;;  %506 = vrot.lane.b32.xlu1 %v483_v28, %s854_s26 }
 0x469   : >> { %v494_v29 = vsel %vm493_vm13, 1, %v848_v14 }
 0x46a   : >> { %v498_v30 = vrot.slane %v494_v29, %v497_v27 }
 0x46c   : >> { %vm499_vm14 = vcmp.eq.s32.totalorder %v498_v30, 1 }
 0x46d   : >> { %v500_v31 = vsel %vm499_vm14, 1, %v848_v14 }
 0x46e   : >> { %501 = vrot.lane.b32.xlu0 %v500_v31, %s854_s26 }
 0x472   : >> { %485 = vperm.xlu0 %754, %v468_v22  }
 0x476   : >> { %761 = vset.pattern.permute.xlu0 %v855_v32 }
 0x4da   : >> { %v507_v34 = vpop.permute.xlu1 %506 }
 0x4e0   : >> { %v502_v33 = vpop.permute.xlu0 %501 }
 0x4e1   : >> { %vm503_vm15 = vcmp.ne.s32.totalorder %v502_v33, 0 }
 0x4e2   : >> { %vm504_vm0 = vmand %vm377_vm8, %vm503_vm15 }
 0x4e3   : >> { %v509_v36 = vsel %vm504_vm0, 0.0, %v507_v34 }
 0x4e4   : >> { %vm519_vm1 = vcmp.gt.f32.partialorder %v509_v36, 0.5 }
 0x4e5   : >> { %v520_v37 = vsel %vm519_vm1, 1, %v848_v14 }
 0x4e6   : >> { %537 = vperm.xlu0 %761, %v520_v37   ;;  %v524_v38 = vrot.slane %v520_v37, %v523_v35 }
 0x4e8   : >> { %vm525_vm2 = vcmp.eq.s32.totalorder %v524_v38, 1 }
 0x4e9   : >> { %v526_v39 = vsel %vm525_vm2, 1, %v848_v14 }
 0x4ea   : >> { %527 = vrot.lane.b32.xlu1 %v526_v39, %s854_s26  ;;  %763 = vset.pattern.permute.xlu0 %v856_v40 }
 0x4ee   : >> { %532 = vrot.lane.b32.xlu1 %v509_v36, %s854_s26 }
 0x4f1   : >> { %v486_v53 = vpop.permute.xlu0 %485 }
 0x4f2   : >> { %407 = vperm.xlu1 %757, %v1010_v59   ;;  %vm487_vm14 = vcmp.eq.s32.totalorder %v486_v53, 1 }
 0x4f3   : >> { %vm488_vm15 = vmand %vm989_vm5, %vm487_vm14 }
 0x4f6   : >> { %758 = vset.pattern.permute.xlu1 %v849_v15 }
 0x4f7   : >> { %433 = vperm.xlu1 %758, %v1019_v4  }
 0x4fb   : >> { %759 = vset.pattern.permute.xlu1 %v846_v12  ;;  %v388_v12 = vsel %vm387_vm9, 0.0, %v838_v8 }
 0x4fc   : >> { %459 = vperm.xlu1 %759, %v442_v13   ;;  %v412_v47 = vrot.slane %v388_v12, 7 }
 0x500   : >> { %760 = vset.pattern.permute.xlu1 %v857_v41 }
 0x501   : >> { %511 = vperm.xlu1 %760, %v494_v29  }
 0x505   : >> { %762 = vset.pattern.permute.xlu1 %v856_v40 }
 0x55c   : >> { %v528_v42 = vpop.permute.xlu1 %527 }
 0x55d   : >> { %vm529_vm3 = vcmp.ne.s32.totalorder %v528_v42, 0 }
 0x55e   : >> { %vm530_vm4 = vmand %vm377_vm8, %vm529_vm3 }
 0x560   : >> { %v533_v43 = vpop.permute.xlu1 %532 }
 0x561   : >> { %v535_v44 = vsel %vm530_vm4, 0.0, %v533_v43 }
 0x562   : >> { %vm545_vm7 = vcmp.gt.f32.partialorder %v535_v44, 0.5 }
 0x563   : >> { %v546_v45 = vsel %vm545_vm7, 1, %v848_v14 }
 0x564   : >> { %548 = vperm.xlu1 %762, %v546_v45  }
 0x565   : >> { %v538_v58 = vpop.permute.xlu0 %537 }
 0x566   : >> { %vm539_vm2 = vcmp.eq.s32.totalorder %v538_v58, 1 }
 0x567   : >> { %vm540_vm3 = vmand %vm989_vm5, %vm539_vm2 }
 0x571   : >> { %v408_v15 = vpop.permute.xlu1 %407 }
 0x572   : >> { %vm409_vm10 = vcmp.eq.s32.totalorder %v408_v15, 1 }
 0x573   : >> { %vm410_vm11 = vmand %vm989_vm5, %vm409_vm10 }
 0x574   : >> { %v414_v48 = vsel %vm410_vm11, 0.0, %v412_v47 }
 0x575   : >> { %v438_v14 = vrot.slane %v414_v48, 7 }
 0x576   : >> { %v434_v46 = vpop.permute.xlu1 %433 }
 0x577   : >> { %vm435_vm8 = vcmp.eq.s32.totalorder %v434_v46, 1 }
 0x578   : >> { %vm436_vm12 = vmand %vm989_vm5, %vm435_vm8 }
 0x579   : >> { %v440_v50 = vsel %vm436_vm12, 0.0, %v438_v14 }
 0x57a   : >> { %v464_v52 = vrot.slane %v440_v50, 7 }
 0x57b   : >> { %v460_v49 = vpop.permute.xlu1 %459 }
 0x57c   : >> { %vm461_vm13 = vcmp.eq.s32.totalorder %v460_v49, 1 }
 0x57d   : >> { %vm462_vm6 = vmand %vm989_vm5, %vm461_vm13 }
 0x57e   : >> { %v466_v8 = vsel %vm462_vm6, 0.0, %v464_v52 }
 0x57f   : >> { %v490_v54 = vrot.slane %v466_v8, 7 }
 0x580   : >> { %v512_v55 = vpop.permute.xlu1 %511 }
 0x581   : >> { %v492_v56 = vsel %vm488_vm15, 0.0, %v490_v54  ;;  %vm513_vm0 = vcmp.eq.s32.totalorder %v512_v55, 1 }
 0x582   : >> { %v516_v57 = vrot.slane %v492_v56, 7  ;;  %vm514_vm1 = vmand %vm989_vm5, %vm513_vm0 }
 0x584   : >> { %v518_v59 = vsel %vm514_vm1, 0.0, %v516_v57 }
 0x585   : >> { %v542_v60 = vrot.slane %v518_v59, 7 }
 0x587   : >> { %v544_v61 = vsel %vm540_vm3, 0.0, %v542_v60 }
 0x588   : >> { %v553_v63 = vrot.slane %v544_v61, 7 }
 0x5e3   : >> { %v549_v62 = vpop.permute.xlu1 %548  ;;  %220 = sbr.rel (!%p218_p11) target bundleno = 33 (0x21), region = 81 }
 0x5e4   : >> { %vm550_vm4 = vcmp.eq.s32.totalorder %v549_v62, 1 }
 0x5e5   : >> { %vm551_vm7 = vmand %vm989_vm5, %vm550_vm4 }
 0x5e6   : >> { %v555_v0 = vsel %vm551_vm7, 0.0, %v553_v63 }
 0x5e7   : >> { %v557_v4 = vrot.slane %v555_v0, 7  }
 0x5e9   : >> { %v1137_v8 = vmov %v557_v4  ;;  %559 = vst [vmem:[%s953_s10] sm:$0x1] (%p218_p11), %v557_v4 }
 0x5ea   : > { %777 = shalt.err (!%p774_p4)
}
 0x5eb   : > { %s778_s16 = scalar_lea.hbm %s1090_s4, 16  ;;  %s782_s11 = scalar_lea.hbm %s1132_s3, 32 }
 0x5ec   : > { %p779_p7 = scmp.ne.s32.totalorder %s1090_s4, %s778_s16  ;;  %p783_p10 = scmp.lt.u32.totalorder %s1090_s4, %s1132_s3 }
 0x5ed   : > { %p784_p11 = scmp.lt.u32.totalorder %s782_s11, %s778_s16  ;;  %p786_p13 = scmp.lt.u32.totalorder %s778_s16, %s1090_s4 }
 0x5ee   : > { %p780_p8 = pnand %p779_p7, %p917_p5 }
 0x5ef   : > { %p785_p12 = por %p784_p11, %p783_p10 }
 0x5f0   : > { %p781_p9 = pneg %p780_p8 }
 0x5f1   : > { %p787_p0 = por %p786_p13, %p785_p12 }
 0x5f3   : > { %p788_p1 = pnand %p787_p0, %p781_p9 }
 0x5f5   : > { %791 = shalt.err (!%p788_p1)
}
 0x5f6   : > { %683 = dma.vmem_to_hbm [thread:$0]  (%p917_p5), %s574_s5, 16, %s1090_s4, %s561_s6  }
 0x5f7 PF: > { %p689_p2 = scmp.ge.s32.totalorder %s834_s15, 2  ;;  %s585_s20 = sand.u32 1, %s822_s12  }
 0x5f8   : > { %s586_s25 = scalar_lea.sflag [#allocation3], %s585_s20 }
 0x5f9   : > { %p686_p3 = pnand %p689_p2, %p921_p6 }
 0x5fb   : > { %817 = dma.done.wait (!%p686_p3), %s586_s25, 16  }
 0x5fc   : > { %819 = vsyncadd (!%p686_p3), %s586_s25, 4294967280  ;;  %p13_p4 = scmp.ge.s32.totalorder %s904_s18, 4   ;;  %s1138_s12 = smov %s826_s13 }
 0x5fd   : > { %s1139_s13 = smov %s830_s14  ;;  %s1140_s14 = smov %s915_s21 }
 0x5fe   : > { %s1141_s15 = smov %s904_s18  ;;  %15 = sbr.rel (!%p13_p4) target bundleno = 3 (0x3), region = 92 }
 0x605   :  { %590 = vsyncpa [#allocation3], 1 }
 0x606   :  { %592 = vsyncpa [#allocation3 + $0x1], 1 }

</bundles_post_ra>
